<compile_context>
chip_gen: v6e
topology: v6e:2x2x1
jax: 0.10.0
libtpu: 0.0.40
codegen_flags: <defaults>
</compile_context>

<pallas_src>
import jax
import jax.numpy as jnp
import numpy as np
from jax.experimental import pallas as pl
from jax.experimental.pallas import tpu as pltpu


OUT_PAD = 128  # lane-dense output width (num_labels zero-padded to one lane span)


# ----------------------------- Pallas kernel --------------------------------

def _linear_kernel(x_ref, w_ref, b_ref, o_ref):
    # x_ref: (TM, D)        f32/bf16 row tile of hidden states (cast in-kernel)
    # w_ref: (D, OUT_PAD)   bf16 classifier weight (transposed, zero-padded)
    # b_ref: (1, OUT_PAD)   f32  classifier bias (zero-padded)
    # o_ref: (TM, OUT_PAD)  bf16 logits (lane-dense -> unmasked stores, half bytes)
    x = x_ref[...].astype(jnp.bfloat16)   # no-op if producer already emits bf16
    acc = jnp.dot(x, w_ref[...], preferred_element_type=jnp.float32)
    o_ref[...] = (acc + b_ref[...]).astype(o_ref.dtype)


def _choose_tm(n_rows, tm_target):
    """Large row tile (multiple of 8), but keep >=2 grid steps so both v7x
    TensorCores receive work under dimension_semantics=("parallel",)."""
    n8 = ((n_rows + 7) // 8) * 8
    half = ((n8 // 2) // 8) * 8
    tm = min(tm_target, half) if half >= 8 else n8
    return max(tm, 8)


def linear_pallas(x2, w_pad_bf16, b_pad_f32, *, tm_target=1024):
    """Token classifier on flattened rows.

    x2          : (N, D)  activations, f32 or bf16, passed as-is (no pad/cast pass)
    w_pad_bf16  : (D, 128) bf16 zero-padded classifier weight (prepared once)
    b_pad_f32   : (1, 128) f32  zero-padded classifier bias   (prepared once)
    returns     : (N, 128) bf16 logits (lane-dense)
    """
    N, D = x2.shape
    tm = _choose_tm(N, tm_target)
    grid = (pl.cdiv(N, tm),)   # ragged last block handled by Pallas edge masking

    x_bytes = int(N) * int(D) * int(jnp.dtype(x2.dtype).itemsize)
    cost = pl.CostEstimate(
        flops=2 * N * D * OUT_PAD,
        transcendentals=0,
        bytes_accessed=x_bytes + D * OUT_PAD * 2 + OUT_PAD * 4 + N * OUT_PAD * 2,
    )

    return pl.pallas_call(
        _linear_kernel,
        out_shape=jax.ShapeDtypeStruct((N, OUT_PAD), jnp.bfloat16),
        grid_spec=pltpu.PrefetchScalarGridSpec(
            num_scalar_prefetch=0,
            grid=grid,
            in_specs=[
                pl.BlockSpec((tm, D), lambda i: (i, 0)),         # x row tile
                pl.BlockSpec((D, OUT_PAD), lambda i: (0, 0)),    # weight, resident
                pl.BlockSpec((1, OUT_PAD), lambda i: (0, 0)),    # bias, resident
            ],
            out_specs=pl.BlockSpec((tm, OUT_PAD), lambda i: (i, 0)),
        ),
        compiler_params=pltpu.CompilerParams(
            dimension_semantics=("parallel",),       # shards steps across v7x's 2 TCs
            vmem_limit_bytes=32 * 1024 * 1024,       # headroom for tm>=1024 on v5e
        ),
        cost_estimate=cost,
    )(x2, w_pad_bf16, b_pad_f32)


# ------------------------------ parameter prep --------------------------------

def prepare_params(w, b):
    """One-time prep: torch-style Linear weight (OUT, D) and bias (OUT,) ->
    lane-dense padded bf16 weight and f32 bias for the kernel."""
    num_labels, D = w.shape
    w_pad = jnp.zeros((D, OUT_PAD), jnp.bfloat16).at[:, :num_labels].set(
        jnp.asarray(w).T.astype(jnp.bfloat16))
    b_pad = jnp.zeros((1, OUT_PAD), jnp.float32).at[0, :num_labels].set(
        jnp.asarray(b).astype(jnp.float32))
    return {
        "w_pad_bf16": w_pad,
        "b_pad": b_pad,
        "b": jnp.asarray(b).astype(jnp.float32),
        "num_labels": int(num_labels),
    }


# ------------------------------ forward glue ---------------------------------

def _compact_logits(logits, attention_mask, valid_ids, bias):
    """Vectorized equivalent of the module's python gather loop, applied AFTER
    the linear layer.  Because the linear is per-row, compacting logits is
    identical to compacting hidden states first; padded positions are filled
    with the bias, which equals linear(zero-row) in the reference module."""
    B, L, OUT = logits.shape
    keep = (valid_ids == 1) & (attention_mask == 1)                    # (B, L)
    dest = jnp.where(keep, jnp.cumsum(keep.astype(jnp.int32), axis=1) - 1, L)
    batch_idx = jnp.arange(B)[:, None]
    init = jnp.broadcast_to(bias.astype(logits.dtype)[None, None, :], (B, L, OUT))
    compacted = init.at[batch_idx, dest].set(logits, mode="drop")
    lengths = jnp.sum(keep.astype(jnp.int32), axis=1)
    return compacted, lengths


def ner_forward(params, sequence_output, input_ids, attention_mask, valid_ids):
    """Forward pass of Ner with use_rnn=False, use_crf=False, labels=None."""
    del input_ids  # only used by the reference for bookkeeping, not for logits
    B, L, D = sequence_output.shape
    num_labels = params["num_labels"]
    # self.dropout in eval mode is the identity.
    # Hot path: logits for every raw token position (Pallas MXU kernel over
    # large flattened-row tiles, bf16 compute / bf16 writeback), then compact
    # the cheap OUT-wide logits in f32.
    x2 = sequence_output.reshape(B * L, D)              # metadata-only reshape
    logits_pad = linear_pallas(x2, params["w_pad_bf16"], params["b_pad"])
    logits_all = (logits_pad[:, :num_labels]
                  .astype(jnp.float32)
                  .reshape(B, L, num_labels))
    logits, _lengths = _compact_logits(logits_all, attention_mask, valid_ids,
                                       params["b"])
    return logits


# ---------------------------------- main --------------------------------------

if __name__ == "__main__":
    # Small, deterministic shapes consistent with the module (scaled-down BERT
    # hidden size, typical BIO tag count).
    B, L, D, NUM_LABELS = 2, 16, 128, 9

    key = jax.random.PRNGKey(0)
    k_seq, k_ids, k_valid, k_w, k_b = jax.random.split(key, 5)

    sequence_output = jax.random.normal(k_seq, (B, L, D), dtype=jnp.float32)
    input_ids = jax.random.randint(k_ids, (B, L), 0, 1000, dtype=jnp.int32)
    attention_mask = jnp.concatenate(
        [jnp.ones((B, 12), jnp.int32), jnp.zeros((B, 4), jnp.int32)], axis=1)
    valid_ids = (jax.random.uniform(k_valid, (B, L)) > 0.3).astype(jnp.int32)

    # torch.nn.Linear(rnn_input_dim, num_labels): weight (OUT, D), bias (OUT,)
    w = (jax.random.normal(k_w, (NUM_LABELS, D), dtype=jnp.float32) * 0.02)
    b = (jax.random.normal(k_b, (NUM_LABELS,), dtype=jnp.float32) * 0.02)
    params = prepare_params(w, b)   # padded bf16 classifier built once

    logits = ner_forward(params, sequence_output, input_ids,
                         attention_mask, valid_ids)
    jax.block_until_ready(logits)

    # Reference: exact mirror of the PyTorch forward (compact hidden states via
    # the python double loop, then linear) computed in f32 with numpy.
    seq_np = np.asarray(sequence_output)
    am_np = np.asarray(attention_mask)
    vi_np = np.asarray(valid_ids)
    valid_ref = np.zeros_like(seq_np)
    for i in range(B):
        jj = -1
        for j in range(L):
            if vi_np[i, j] == 1 and am_np[i, j] == 1:
                jj += 1
                valid_ref[i, jj] = seq_np[i, j]
    ref_logits = valid_ref @ np.asarray(w).T + np.asarray(b)

    # bf16 activations/weights/output with f32 accumulation -> relaxed tolerance.
    np.testing.assert_allclose(np.asarray(logits), ref_logits,
                               rtol=2e-2, atol=2e-2)

    assert logits.shape == (B, L, NUM_LABELS)
    print("KERNEL_OK")
</pallas_src>

<mosaic_0001>
module attributes {stable_mosaic.version = 11 : i64} {
  func.func @_linear_kernel(%arg0: i32, %arg1: memref<16x128xf32, #tpu.memory_space<vmem>>, %arg2: memref<128x128xbf16, #tpu.memory_space<vmem>>, %arg3: memref<1x128xf32, #tpu.memory_space<vmem>>, %arg4: memref<16x128xbf16, #tpu.memory_space<vmem>>) attributes {dimension_semantics = [#tpu.dimension_semantics<parallel>], iteration_bounds = array<i64: 2>, scalar_prefetch = 0 : i64, scratch_operands = 0 : i64, tpu.core_type = #tpu.core_type<tc>, window_params = [{transform_indices = @transform_0, window_bounds = array<i64: 16, 128>}, {pipeline_mode = #tpu.pipeline_mode<synchronous>, transform_indices = @transform_1, window_bounds = array<i64: 128, 128>}, {pipeline_mode = #tpu.pipeline_mode<synchronous>, transform_indices = @transform_2, window_bounds = array<i64: 1, 128>}, {transform_indices = @transform_3, window_bounds = array<i64: 16, 128>}]} {
    %c0 = arith.constant 0 : index
    %c0_0 = arith.constant 0 : index
    %0 = vector.load %arg1[%c0, %c0_0] : memref<16x128xf32, #tpu.memory_space<vmem>>, vector<16x128xf32>
    %1 = arith.truncf %0 : vector<16x128xf32> to vector<16x128xbf16>
    %c0_1 = arith.constant 0 : index
    %c0_2 = arith.constant 0 : index
    %2 = vector.load %arg2[%c0_1, %c0_2] : memref<128x128xbf16, #tpu.memory_space<vmem>>, vector<128x128xbf16>
    %cst = arith.constant dense<0.000000e+00> : vector<16x128xf32>
    %3 = tpu.matmul %1, %2, %cst {dimension_numbers = #tpu.dot_dimension_numbers<[1], [0], [0], [1], [0, 0, 1, 1], [], []>} : vector<16x128xbf16>, vector<128x128xbf16>, vector<16x128xf32> -> vector<16x128xf32>
    %c0_3 = arith.constant 0 : index
    %c0_4 = arith.constant 0 : index
    %4 = vector.load %arg3[%c0_3, %c0_4] : memref<1x128xf32, #tpu.memory_space<vmem>>, vector<1x128xf32>
    %5 = vector.broadcast %4 : vector<1x128xf32> to vector<16x128xf32>
    %6 = arith.addf %3, %5 : vector<16x128xf32>
    %7 = arith.truncf %6 : vector<16x128xf32> to vector<16x128xbf16>
    %c0_5 = arith.constant 0 : index
    %c0_6 = arith.constant 0 : index
    %8 = vector.load %arg4[%c0_5, %c0_6] : memref<16x128xbf16, #tpu.memory_space<vmem>>, vector<16x128xbf16>
    tpu.vector_store %arg4[%c0_5, %c0_6], %7 {strides = array<i32>} : memref<16x128xbf16, #tpu.memory_space<vmem>>, vector<16x128xbf16>,
    return
  }
  func.func @transform_0(%arg0: i32) -> (i32, i32) {
    %c0_i32 = arith.constant 0 : i32
    %c0_i32_0 = arith.constant 0 : i32
    return %arg0, %c0_i32 : i32, i32
  }
  func.func @transform_1(%arg0: i32) -> (i32, i32) {
    %c0_i32 = arith.constant 0 : i32
    %c0_i32_0 = arith.constant 0 : i32
    %c0_i32_1 = arith.constant 0 : i32
    return %c0_i32, %c0_i32_0 : i32, i32
  }
  func.func @transform_2(%arg0: i32) -> (i32, i32) {
    %c0_i32 = arith.constant 0 : i32
    %c0_i32_0 = arith.constant 0 : i32
    %c0_i32_1 = arith.constant 0 : i32
    return %c0_i32, %c0_i32_0 : i32, i32
  }
  func.func @transform_3(%arg0: i32) -> (i32, i32) {
    %c0_i32 = arith.constant 0 : i32
    %c0_i32_0 = arith.constant 0 : i32
    return %arg0, %c0_i32 : i32, i32
  }
}

</mosaic_0001>

<bundles_post_ra>
// kernel: tpu_custom_call.1
= control target key start
LH: loop header
LB: loop body
LE: loop exit
PB: predicated region body
PF: predicated region fallthrough
CT: control target
= control target key end

     0   :  { %8 = vsyncpa [#allocation3], 0  ;;  %s907_s0 = inlined_call_operand.hbm [shape: f32[32,128], index: 0, kind: input, shape index: {}]   ;;  %s908_s1 = inlined_call_operand.hbm [shape: bf16[128,128], index: 1, kind: input, shape index: {}]   ;;  %s909_s2 = inlined_call_operand.vmem [shape: f32[1,128], index: 2, kind: input, shape index: {}]   ;;  %s910_s3 = inlined_call_operand.hbm [shape: bf16[32,128], index: 3, kind: output, shape index: {}]  }
   0x1   :  { %10 = vsyncpa [#allocation3 + $0x1], 0 }
   0x2   :  { %11 = vsyncpa [#allocation6], 0 }
   0x3   :  { %12 = vsyncpa [#allocation4], 0 }
   0x4   :  { %14 = vsyncpa [#allocation4 + $0x1], 0  ;;  %s722_s12 = smov 0   ;;  %s724_s13 = smov 0  }
   0x5   :  { %s726_s14 = smov 0   ;;  %s728_s15 = smov 0  }
   0x6 LB: > { %s743_s16 = sadd.s32 4294967295, %s689_s15   ;;  %s429_s17 = sadd.s32 4294967294, %s689_s15   ;;  %s689_s15 = sphi %s728_s15, %s932_s15   ;;  %s685_s14 = sphi %s726_s14, %s931_s14   ;;  %s681_s13 = sphi %s724_s13, %s930_s13   ;;  %s677_s12 = sphi %s722_s12, %s929_s12  }
   0x7   : > { %p40_p0 = scmp.ne.s32.totalorder %s681_s13, %s677_s12  ;;  %p911_p1 = scmp.eq.s32.totalorder %s743_s16, 0 }
   0x8   : > { %p112_p3 = scmp.eq.s32.totalorder %s429_s17, 1  ;;  %p430_p5 = scmp.ge.s32.totalorder %s689_s15, 1 }
   0x9   : > { %p752_p4 = por %p911_p1, %p40_p0  ;;  %p119_p7 = scmp.lt.s32.totalorder %s689_s15, 3 }
   0xa   : > { %p757_p6 = por %p112_p3, %p40_p0  ;;  %s691_s21 = smov [#allocation5]  }
   0xb   : > { %s915_s18 = scalar_select %p752_p4, 1, 0 }
   0xc   : > { %s916_s19 = scalar_select %p757_p6, 1, 0 }
   0xd   : > { %p762_p8 = pnand %p430_p5, %p119_p7  ;;  %s131_s22 = sshll.u32 %s691_s21, 4  ;;  %s132_s22 = int_to_ptr.vmem [resolvable:$true] %s131_s22 }
   0xe   : > { %s776_s24 = sadd.s32 1, %s689_s15   ;;  %s27_s25 = sadd.s32 1, %s685_s14 }
   0xf   : > { %s917_s20 = scalar_select %p762_p8, 1, 0 }
  0x10   : > { %p502_p9 = pneg %p762_p8  ;;  %s24_s26 = ssub.s32 %s689_s15, %s776_s24 }
  0x11   : > { %s578_s27 = scalar_lea.vmem %s132_s22, 1024  ;;  %p586_p5 = scmp.lt.s32.totalorder %s132_s22, %s132_s22 }
  0x12   : > { %p771_p11 = pnand %p502_p9, %p911_p1  ;;  %p579_p13 = scmp.ne.s32.totalorder %s132_s22, %s578_s27 }
  0x13   : > { %p587_p7 = scmp.lt.s32.totalorder %s578_s27, %s578_s27 }
  0x14   : > { %p569_p12 = pneg %p771_p11 }
  0x15   : > { %p588_p10 = por %p587_p7, %p586_p5 }
  0x16   : > { %p581_p0 = pnand %p579_p13, %p569_p12 }
  0x18   : > { %p582_p3 = pneg %p581_p0 }
  0x1a   : > { %p589_p2 = pnand %p588_p10, %p582_p3 }
  0x1c   : > { %592 = shalt.err (!%p589_p2)
}
  0x1d   : > { %s692_s28 = smov 64   ;;  %s693_s29 = smov 4  }
  0x1e   : > { %505 = dma.hbm_to_vmem [thread:$0]  (!%p771_p11), %s908_s1, 1024, %s132_s22, [#allocation6], %s692_s28, %s692_s28, %s693_s29  }
  0x1f   : > { %p25_p9 = scmp.eq.s32.totalorder %s24_s26, 0  ;;  %p34_p12 = scmp.ne.s32.totalorder %s685_s14, %s681_s13 }
  0x20   : > { %p35_p10 = scmp.eq.s32.totalorder %s689_s15, 0  ;;  %p515_p2 = scmp.lt.s32.totalorder %s689_s15, 2 }
  0x21   : > { %s793_s5 = scalar_select %p25_p9, %s685_s14, %s27_s25  }
  0x22   : > { %p36_p13 = por %p35_p10, %p34_p12  ;;  %p919_p0 = scmp.eq.s32.totalorder %s743_s16, 1 }
  0x23   : > { %s148_s7 = sand.u32 1, %s685_s14   ;;  %s456_s8 = sshll.u32 %s689_s15, 8 }
  0x24   : > { %p797_p3 = por %p919_p0, %p34_p12  ;;  %s433_s9 = sshll.u32 %s148_s7, 4 }
  0x25   : > { %s806_s17 = scalar_lea.hbm %s907_s0, %s456_s8  ;;  %s152_s21 = scalar_lea.vmem [#allocation2], %s433_s9 }
  0x26   : > { %s920_s6 = scalar_select %p797_p3, 1, 0 }
  0x27   : > { %s159_s22 = sshll.u32 %s152_s21, 4  ;;  %p808_p11 = pnand %p515_p2, %p36_p13  ;;  %s812_s22 = int_to_ptr.vmem [resolvable:$true] %s159_s22 }
  0x28   : > { %s814_s25 = scalar_lea.sflag [#allocation3], %s148_s7  ;;  %s593_s26 = scalar_lea.hbm %s806_s17, 256 }
  0x29   : > { %p594_p5 = scmp.ne.s32.totalorder %s806_s17, %s593_s26  ;;  %p595_p7 = pneg %p808_p11 }
  0x2a   : > { %s598_s29 = scalar_lea.hbm %s907_s0, 512  ;;  %p599_p10 = scmp.lt.s32.totalorder %s806_s17, %s907_s0 }
  0x2b   : > { %p596_p9 = pnand %p595_p7, %p594_p5  ;;  %p600_p2 = scmp.lt.s32.totalorder %s598_s29, %s593_s26 }
  0x2d   : > { %p597_p12 = pneg %p596_p9  ;;  %p601_p13 = por %p600_p2, %p599_p10 }
  0x2f   : > { %p602_p0 = pnand %p601_p13, %p597_p12 }
  0x31   : > { %605 = shalt.err (!%p602_p0)
}
  0x32   : > { %s606_s7 = scalar_lea.vmem %s812_s22, 256  ;;  %s694_s8 = smov [#allocation2]  }
  0x33   : > { %p607_p1 = scmp.ne.s32.totalorder %s812_s22, %s606_s7  ;;  %s611_s9 = sshll.u32 %s694_s8, 4  ;;  %s612_s9 = int_to_ptr.vmem [resolvable:$false] %s611_s9 }
  0x34   : > { %s613_s10 = scalar_lea.vmem %s612_s9, 512  ;;  %p614_p9 = scmp.lt.s32.totalorder %s812_s22, %s612_s9 }
  0x35   : > { %p609_p6 = pnand %p607_p1, %p595_p7  ;;  %p615_p3 = scmp.lt.s32.totalorder %s613_s10, %s606_s7 }
  0x37   : > { %p610_p5 = pneg %p609_p6  ;;  %p616_p4 = por %p615_p3, %p614_p9 }
  0x39   : > { %p617_p8 = pnand %p616_p4, %p610_p5 }
  0x3b   : > { %620 = shalt.err (!%p617_p8)
}
  0x3c   : > { %s695_s11 = smov 128   ;;  %s696_s21 = smov 8  }
  0x3d   : > { %509 = dma.hbm_to_vmem [thread:$0]  (!%p808_p11), %s806_s17, 256, %s812_s22, %s814_s25, %s695_s11, %s695_s11, %s696_s21  }
  0x3e   : > { %p922_p1 = scmp.ne.s32.totalorder %s917_s20, 0 }
  0x3f   : > { %s838_s26 = sand.u32 (!%p922_p1), 1, %s681_s13   ;;  %p923_p4 = scmp.ne.s32.totalorder (!%p922_p1), %s915_s18, 0 }
  0x40   : > { %171 = sbr.rel (%p922_p1) target bundleno = 321 (0x141), region = 32  ;;  %s437_s27 = sshll.u32 (!%p922_p1), %s838_s26, 4 }
  0x41   : > { %s174_s28 = scalar_lea.sflag (!%p922_p1), [#allocation3], %s838_s26  ;;  %s842_s29 = scalar_lea.vmem (!%p922_p1), [#allocation2], %s437_s27 }
  0x45   : > { %664 = dma.done.wait (%p923_p4), %s174_s28, 256  }
  0x46   : > { %666 = vsyncadd (%p923_p4), %s174_s28, 4294967040  ;;  %p924_p6 = scmp.eq.s32.totalorder %s743_s16, 0 }
  0x48   : > { %668 = dma.done.wait (%p924_p6), [#allocation6], 1024   ;;  %p925_p8 = pmov %p924_p6 }
  0x49   : > { %v697_v0 = vmov 0.0   ;;  %vm698_vm0 = vmmov 0   ;;  %v559_v1 = vld [vmem:[#allocation5 + $0x38] sm:$0xff]   ;;  %v560_v2 = vld [vmem:[#allocation5 + $0x30] sm:$0xff]   ;;  %v561_v3 = vld [vmem:[#allocation5 + $0x28] sm:$0xff]   ;;  %s439_s18 = sshll.u32 %s838_s26, 3 }
  0x4a   : > { %670 = vsyncadd (%p925_p8), [#allocation6], 4294966272  ;;  %474 = vmatprep.subr.bf16.mxu0 %v697_v0  ;;  %490 = vmatprep.mubr.msk.bf16.mxu0 %vm698_vm0, %v697_v0  ;;  %v562_v4 = vld [vmem:[#allocation5 + $0x20] sm:$0xff]   ;;  %v563_v5 = vld [vmem:[#allocation5 + $0x18] sm:$0xff]   ;;  %s203_s22 = scalar_lea.vmem [#allocation7], %s439_s18  ;;  %s459_s25 = sshll.u32 %s743_s16, 7 }
  0x4b   : > { %475 = vmatpush3.bf16.msra.mxu0 %v559_v1  ;;  %v564_v6 = vld [vmem:[#allocation5 + $0x10] sm:$0xff]   ;;  %v565_v7 = vld [vmem:[#allocation5 + $0x8] sm:$0xff]   ;;  %v566_v8 = vld [vmem:[#allocation5] sm:$0xff]   ;;  %s346_s23 = sshll.u32 %s203_s22, 4  ;;  %s864_s7 = scalar_lea.hbm %s910_s3, %s459_s25  ;;  %s859_s23 = int_to_ptr.vmem [resolvable:$true] %s346_s23 }
  0x4c   : > { %476 = vmatprep.subr.bf16.mxu0 %v697_v0  ;;  %v207_v9 = vld [vmem:[%s842_s29] sm:$0xff]  ;;  %v208_v10 = vld [vmem:[%s842_s29 + $0x8] sm:$0xff]  ;;  %s333_s8 = scalar_lea.sflag [#allocation4], %s838_s26  ;;  %s621_s9 = scalar_lea.vmem %s859_s23, 128 }
  0x4d   : > { %v209_v11 = vpack.c.bf16 %v208_v10, %v207_v9  ;;  %v440_v13 = vld [vmem:[%s909_s2] ss:$0 sm:$0xff]  ;;  %p622_p3 = scmp.ne.s32.totalorder %s859_s23, %s621_s9  ;;  %p926_p11 = scmp.ne.s32.totalorder %s920_s6, 0 }
  0x4e   : > { %s699_s16 = smov [#allocation7]  }
  0x4f   : > { %477 = vmatpush3.bf16.msra.mxu0 %v560_v2  ;;  %p623_p7 = pnand %p622_p3, %p926_p11  ;;  %s625_s10 = sshll.u32 %s699_s16, 4  ;;  %s626_s10 = int_to_ptr.vmem [resolvable:$false] %s625_s10 }
  0x50   : > { %478 = vmatprep.subr.bf16.mxu0 %v697_v0  ;;  %s627_s11 = scalar_lea.vmem %s626_s10, 256  ;;  %p628_p10 = scmp.lt.s32.totalorder %s859_s23, %s626_s10 }
  0x51   : > { %p624_p12 = pneg %p623_p7  ;;  %p629_p2 = scmp.lt.s32.totalorder %s627_s11, %s621_s9 }
  0x53   : > { %479 = vmatpush3.bf16.msra.mxu0 %v561_v3  ;;  %p630_p13 = por %p629_p2, %p628_p10 }
  0x54   : > { %480 = vmatprep.subr.bf16.mxu0 %v697_v0 }
  0x55   : > { %p631_p0 = pnand %p630_p13, %p624_p12 }
  0x57   : > { %481 = vmatpush3.bf16.msra.mxu0 %v562_v4 }
  0x58   : > { %482 = vmatprep.subr.bf16.mxu0 %v697_v0 }
  0x5b   : > { %483 = vmatpush3.bf16.msra.mxu0 %v563_v5 }
  0x5c   : > { %484 = vmatprep.subr.bf16.mxu0 %v697_v0 }
  0x5f   : > { %485 = vmatpush3.bf16.msra.mxu0 %v564_v6 }
  0x60   : > { %486 = vmatprep.subr.bf16.mxu0 %v697_v0 }
  0x63   : > { %487 = vmatpush3.bf16.msra.mxu0 %v565_v7 }
  0x64   : > { %488 = vmatprep.subr.bf16.mxu0 %v697_v0 }
  0x67   : > { %489 = vmatpush3.bf16.msra.mxu0 %v566_v8 }
  0x6a   : > { %491 = vmatmul.mubr.bf16.vlgmr.msra.gmra.mxu0 %v209_v11 }
 0x12a   : > { %v315_v12 = vpop.f32.mrf.mxu0 }
 0x12b   : > { %v316_v16 = vadd.f32 %v440_v13, %v315_v12 }
 0x12c   : > { %v492_v14 = vpop.f32.mrf.mxu0 }
 0x12e   : > { %v318_v15 = vpop.f32.mrf.mxu0 }
 0x12f   : > { %v319_v17 = vadd.f32 %v440_v13, %v318_v15 }
 0x130   : > { %v493_v18 = vpop.f32.mrf.mxu0 }
 0x131   : > { %v463_v19 = vpack.c.bf16 %v319_v17, %v316_v16 }
 0x133   : > { %464 = vst [vmem:[%s203_s22] sm:$0xff] %v463_v19  }
 0x134   : > { %634 = shalt.err (!%p631_p0)
}
 0x135   : > { %s635_s21 = scalar_lea.hbm %s864_s7, 128  ;;  %s639_s29 = scalar_lea.hbm %s910_s3, 256 }
 0x136   : > { %p636_p5 = scmp.ne.s32.totalorder %s864_s7, %s635_s21  ;;  %p640_p4 = scmp.lt.s32.totalorder %s864_s7, %s910_s3 }
 0x137   : > { %p641_p6 = scmp.lt.s32.totalorder %s639_s29, %s635_s21 }
 0x138   : > { %p637_p9 = pnand %p636_p5, %p926_p11 }
 0x139   : > { %p642_p8 = por %p641_p6, %p640_p4 }
 0x13a   : > { %p638_p1 = pneg %p637_p9 }
 0x13c   : > { %p643_p3 = pnand %p642_p8, %p638_p1 }
 0x13e   : > { %646 = shalt.err (!%p643_p3)
}
 0x13f   : > { %s700_s17 = smov 64   ;;  %s701_s22 = smov 4  }
 0x140   : > { %500 = dma.vmem_to_hbm [thread:$0]  (%p926_p11), %s859_s23, 128, %s864_s7, %s333_s8, %s700_s17, %s700_s17, %s701_s22  }
 0x141 PF: > { %s361_s25 = sand.u32 1, %s677_s12   ;;  %p927_p7 = scmp.ne.s32.totalorder %s916_s19, 0 }
 0x142   : > { %p928_p12 = scmp.ge.s32.totalorder %s689_s15, 2  ;;  %s362_s30 = scalar_lea.sflag [#allocation4], %s361_s25 }
 0x144   : > { %p511_p10 = pnand %p928_p12, %p927_p7 }
 0x146   : > { %p512_p2 = pneg %p511_p10 }
 0x148   : > { %672 = dma.done.wait (%p512_p2), %s362_s30, 128  }
 0x149   : > { %674 = vsyncadd (%p512_p2), %s362_s30, 4294967168  ;;  %p17_p13 = scmp.ge.s32.totalorder %s776_s24, 4   ;;  %s929_s12 = smov %s681_s13 }
 0x14a   : > { %s930_s13 = smov %s685_s14  ;;  %s931_s14 = smov %s793_s5 }
 0x14b   : > { %s932_s15 = smov %s776_s24  ;;  %19 = sbr.rel (!%p17_p13) target bundleno = 6 (0x6), region = 81 }
 0x150   :  { %367 = vsyncpa [#allocation3], 1 }
 0x151   :  { %369 = vsyncpa [#allocation3 + $0x1], 1 }
 0x152   :  { %370 = vsyncpa [#allocation6], 1 }
 0x153   :  { %371 = vsyncpa [#allocation4], 1 }
 0x154   :  { %373 = vsyncpa [#allocation4 + $0x1], 1 }

</bundles_post_ra>
